<compile_context>
chip_gen: v7x
topology: tpu7x:2x2x1
jax: 0.10.0
libtpu: 0.0.40
codegen_flags: <defaults>
</compile_context>

<pallas_src>
import functools

import jax
import jax.numpy as jnp
from jax.experimental import pallas as pl
from jax.experimental.pallas import tpu as pltpu

_SMALL_BYPASS_BYTES = 1 << 20          # < 1 MiB: launch overhead >> copy time, skip kernel
_CHUNK2_BYTES = 1 << 20                # >= 1 MiB: 2 DMA streams
_CHUNK4_BYTES = 4 << 20                # >= 4 MiB: 4 DMA streams


def _dma_copy_kernel(num_chunks, x_hbm, o_hbm, sems):
    """Pure HBM->HBM identity copy via async DMA (no VMEM staging, no compute)."""
    lead = x_hbm.shape[0]
    chunk = lead // num_chunks
    copies = []
    # Start all chunk DMAs first (independent semaphores), then wait on all of them.
    for i in range(num_chunks):
        start = i * chunk
        size = chunk if i < num_chunks - 1 else lead - start
        cp = pltpu.make_async_copy(
            x_hbm.at[pl.ds(start, size)],
            o_hbm.at[pl.ds(start, size)],
            sems.at[i],
        )
        cp.start()
        copies.append(cp)
    for cp in copies:
        cp.wait()


@jax.jit
def _dma_identity_copy(x):
    """Pallas identity copy of an arbitrary-shaped array as a single HBM->HBM DMA
    (split into up to 4 concurrent chunk DMAs for large arrays)."""
    nbytes = x.size * jnp.dtype(x.dtype).itemsize
    lead = x.shape[0]

    if nbytes >= _CHUNK4_BYTES and lead >= 4:
        num_chunks = 4
    elif nbytes >= _CHUNK2_BYTES and lead >= 2:
        num_chunks = 2
    else:
        num_chunks = 1

    return pl.pallas_call(
        functools.partial(_dma_copy_kernel, num_chunks),
        out_shape=jax.ShapeDtypeStruct(x.shape, x.dtype),
        in_specs=[pl.BlockSpec(memory_space=pl.ANY)],
        out_specs=pl.BlockSpec(memory_space=pl.ANY),
        scratch_shapes=[pltpu.SemaphoreType.DMA((num_chunks,))],
        cost_estimate=pl.CostEstimate(
            flops=0, transcendentals=0, bytes_accessed=2 * nbytes),
    )(x)


def print_layer(x, *, force_kernel=False):
    """Pallas equivalent of the PyTorch print_layer.forward.

    Prints the (static) shape — same semantics as `print(x.shape)` in the PyTorch
    module — and returns x unchanged.  Large arrays go through a Pallas HBM->HBM DMA
    identity copy; small arrays (and 0-d / empty arrays) are returned directly since
    kernel launch overhead dominates there.
    """
    print(tuple(x.shape))
    nbytes = x.size * jnp.dtype(x.dtype).itemsize
    if x.ndim == 0 or x.size == 0:
        return x
    if not force_kernel and nbytes < _SMALL_BYPASS_BYTES:
        return x
    return _dma_identity_copy(x)


if __name__ == "__main__":
    key = jax.random.PRNGKey(0)

    # Small NCHW input consistent with a typical conv-net activation.
    # 1) Default path (small-input bypass — identical semantics, zero overhead).
    x = jax.random.normal(key, (2, 4, 16, 16), dtype=jnp.float32)
    y = jax.block_until_ready(print_layer(x))
    assert y.shape == x.shape and y.dtype == x.dtype
    assert bool(jnp.array_equal(y, x)), "bypass path mismatch"

    # 2) Force the Pallas DMA kernel on the same small input (single-chunk DMA).
    y_k = jax.block_until_ready(print_layer(x, force_kernel=True))
    assert bool(jnp.array_equal(y_k, x)), "DMA kernel mismatch (small aligned input)"

    # 3) Lane-ragged numel (numel % 128 != 0): no padding/slicing needed with pl.ANY DMA.
    x2 = jax.random.normal(jax.random.PRNGKey(0), (3, 5, 7, 2), dtype=jnp.float32)
    y2 = jax.block_until_ready(print_layer(x2, force_kernel=True))
    assert bool(jnp.array_equal(y2, x2)), "DMA kernel mismatch (ragged numel)"

    # 4) Larger activation (2 MiB) exercising the multi-chunk concurrent-DMA path.
    x3 = jax.random.normal(jax.random.PRNGKey(0), (32, 4, 64, 64), dtype=jnp.float32)
    y3 = jax.block_until_ready(print_layer(x3))
    assert bool(jnp.array_equal(y3, x3)), "DMA kernel mismatch (multi-chunk)"

    print("KERNEL_OK")
</pallas_src>

<mosaic_0001>
module attributes {stable_mosaic.version = 11 : i64} {
  func.func @_dma_copy_kernel(%arg0: memref<2x4x16x16xf32, #tpu.memory_space<any>>, %arg1: memref<2x4x16x16xf32, #tpu.memory_space<any>>, %arg2: memref<1x!tpu.dma_semaphore, #tpu.memory_space<semaphore_mem>>) attributes {dimension_semantics = [], scalar_prefetch = 0 : i64, scratch_operands = 1 : i64, tpu.core_type = #tpu.core_type<tc>} {
    %c0_i32 = arith.constant 0 : i32
    %c0_i32_0 = arith.constant 0 : i32
    %c0_i32_1 = arith.constant 0 : i32
    %c0_i32_2 = arith.constant 0 : i32
    %c0_i32_3 = arith.constant 0 : i32
    %0 = tpu.memref_slice %arg0[%c0_i32_0, %c0_i32_1, %c0_i32_2, %c0_i32_3] : memref<2x4x16x16xf32, #tpu.memory_space<any>> -> memref<2x4x16x16xf32, #tpu.memory_space<any>>
    %c0_i32_4 = arith.constant 0 : i32
    %c0_i32_5 = arith.constant 0 : i32
    %c0_i32_6 = arith.constant 0 : i32
    %c0_i32_7 = arith.constant 0 : i32
    %1 = tpu.memref_slice %arg1[%c0_i32_4, %c0_i32_5, %c0_i32_6, %c0_i32_7] : memref<2x4x16x16xf32, #tpu.memory_space<any>> -> memref<2x4x16x16xf32, #tpu.memory_space<any>>
    %2 = tpu.memref_slice %arg2[%c0_i32] : memref<1x!tpu.dma_semaphore, #tpu.memory_space<semaphore_mem>> -> memref<1x!tpu.dma_semaphore, #tpu.memory_space<semaphore_mem>>
    %3 = tpu.memref_squeeze %2 : memref<1x!tpu.dma_semaphore, #tpu.memory_space<semaphore_mem>> -> memref<!tpu.dma_semaphore, #tpu.memory_space<semaphore_mem>>
    tpu.enqueue_dma source(%0 : memref<2x4x16x16xf32, #tpu.memory_space<any>>) target(%1 : memref<2x4x16x16xf32, #tpu.memory_space<any>>) target_semaphore(%3 : memref<!tpu.dma_semaphore, #tpu.memory_space<semaphore_mem>>)
    %c0_i32_8 = arith.constant 0 : i32
    %c0_i32_9 = arith.constant 0 : i32
    %c0_i32_10 = arith.constant 0 : i32
    %c0_i32_11 = arith.constant 0 : i32
    %c0_i32_12 = arith.constant 0 : i32
    %4 = tpu.memref_slice %arg0[%c0_i32_9, %c0_i32_10, %c0_i32_11, %c0_i32_12] : memref<2x4x16x16xf32, #tpu.memory_space<any>> -> memref<2x4x16x16xf32, #tpu.memory_space<any>>
    %c0_i32_13 = arith.constant 0 : i32
    %c0_i32_14 = arith.constant 0 : i32
    %c0_i32_15 = arith.constant 0 : i32
    %c0_i32_16 = arith.constant 0 : i32
    %5 = tpu.memref_slice %arg1[%c0_i32_13, %c0_i32_14, %c0_i32_15, %c0_i32_16] : memref<2x4x16x16xf32, #tpu.memory_space<any>> -> memref<2x4x16x16xf32, #tpu.memory_space<any>>
    %6 = tpu.memref_slice %arg2[%c0_i32_8] : memref<1x!tpu.dma_semaphore, #tpu.memory_space<semaphore_mem>> -> memref<1x!tpu.dma_semaphore, #tpu.memory_space<semaphore_mem>>
    %7 = tpu.memref_squeeze %6 : memref<1x!tpu.dma_semaphore, #tpu.memory_space<semaphore_mem>> -> memref<!tpu.dma_semaphore, #tpu.memory_space<semaphore_mem>>
    tpu.wait_dma2 semaphore(%7 : memref<!tpu.dma_semaphore, #tpu.memory_space<semaphore_mem>>) src(%4 : memref<2x4x16x16xf32, #tpu.memory_space<any>>) dst(%5 : memref<2x4x16x16xf32, #tpu.memory_space<any>>)
    return
  }
}

</mosaic_0001>

<bundles_post_ra>
// kernel: _dma_identity_copy.1
= control target key start
LH: loop header
LB: loop body
LE: loop exit
PB: predicated region body
PF: predicated region fallthrough
CT: control target
= control target key end

     0   :  { %s36_s6 = smov [#allocation2]   ;;  %s37_s7 = smov [#allocation3]   ;;  %s55_s0 = inlined_call_operand.hbm [shape: f32[2,4,16,16], index: 0, kind: input, shape index: {}]   ;;  %s56_s1 = inlined_call_operand.hbm [shape: f32[2,4,16,16], index: 1, kind: output, shape index: {}]  }
   0x1   :  { %s38_s8 = smov 0  }
   0x2   :  { %18 = dma.general %s55_s0, 2048, %s56_s1, %s36_s6, %s37_s7, [#allocation4], %s38_s8, 0  }
   0x3   :  { %34 = dma.done.wait [#allocation2], 2048 }
   0x4   :  { %35 = vsyncadd [#allocation2], 4294965248 }
   0x5   :  { %24 = vsyncmov [#allocation2] }
   0x8   :  { %s25_s13 = vpop.sfrf %24 }
   0x9   :  { %p30_p0 = scmp.ne.s32.totalorder %s25_s13, 0 }
   0xb   :  { %29 = shalt.err (%p30_p0)  }

</bundles_post_ra>
